<compile_context>
chip_gen: v5e
topology: v5e:2x2
jax: 0.10.0
libtpu: 0.0.40
codegen_flags: <defaults>
</compile_context>

<pallas_src>
import math

import jax
import jax.numpy as jnp
from jax.experimental import pallas as pl
from jax.experimental.pallas import tpu as pltpu

# ---- "config" (small synthetic sizes) -------------------------------------
BATCH = 2
SEQ = 8
HIDDEN = 32
NUM_HEADS = 4
HEAD_DIM = HIDDEN // NUM_HEADS  # 8
IS_MASK = True
# TODO(synk): dropout with rate > 0 would need pltpu.prng_* inside the kernel;
#             with attention_dropout_rate = 0.0 it is an exact identity.
# TODO(synk): for scaled-up configs (real H/S) tile the K/V sequence axis flash-style
#             and mark grid-invariant weight specs pipeline_mode=pl.Buffered(1)
#             (v7x has only 64 MiB VMEM); irrelevant at these toy sizes.


def mha_kernel(x_ref, wqkv_ref, bqkv_ref, wo_ref, bo_ref, out_ref, probs_ref):
    """Whole-problem attention forward in a single grid step.

    x_ref:     (B*S, H)        VMEM   (batch folded into M)
    wqkv_ref:  (H, 3H)         VMEM   (packed [Wq | Wk | Wv], used as x @ W)
    bqkv_ref:  (1, 3H)         VMEM
    wo_ref:    (H, H)          VMEM
    bo_ref:    (1, H)          VMEM
    out_ref:   (B*S, H)        VMEM
    probs_ref: (B, S, NH*S)    VMEM   (lane-dense probs slab; wrapper reorders)
    """
    x = x_ref[...]                                               # (B*S, H)

    # Fused Q/K/V projection: one MXU pass instead of three.
    qkv = jnp.dot(x, wqkv_ref[...],
                  preferred_element_type=jnp.float32) + bqkv_ref[...]   # (B*S, 3H)
    qkv3 = qkv.reshape(BATCH, SEQ, 3 * HIDDEN)                   # split leading dim only

    scale = 1.0 / math.sqrt(HEAD_DIM)

    probs_parts = []
    ctx_parts = []
    for h in range(NUM_HEADS):                                   # static unrolled, 4 iters
        lo = h * HEAD_DIM
        hi = (h + 1) * HEAD_DIM
        q_h = qkv3[:, :, lo:hi]                                  # (B, S, D)
        k_h = qkv3[:, :, HIDDEN + lo:HIDDEN + hi]                # (B, S, D)
        v_h = qkv3[:, :, 2 * HIDDEN + lo:2 * HIDDEN + hi]        # (B, S, D)

        # scores = (q @ k^T) / sqrt(d), batched over B
        s = jnp.einsum('bqd,bkd->bqk', q_h, k_h,
                       preferred_element_type=jnp.float32) * scale      # (B, S, S)

        # numerically stable softmax over last axis; reciprocal on EUP slot
        s = s - jnp.max(s, axis=-1, keepdims=True)
        e = jnp.exp(s)
        denom = jnp.sum(e, axis=-1, keepdims=True)
        p = e * pl.reciprocal(denom, approx=False)               # (B, S, S)

        probs_parts.append(p)
        ctx_parts.append(jnp.einsum('bqk,bkd->bqd', p, v_h,
                                    preferred_element_type=jnp.float32))  # (B, S, D)

    # Single lane-dense (width NH*S = 32) store for the attention probabilities.
    probs_ref[...] = jnp.concatenate(probs_parts, axis=-1).astype(probs_ref.dtype)

    # Context: concat over heads == torch permute+reshape, then one output matmul
    # with the batch folded back into the M dim.
    ctx = jnp.concatenate(ctx_parts, axis=-1)                    # (B, S, H)
    ctx2 = ctx.reshape(BATCH * SEQ, HIDDEN)                      # merge leading dims
    out = jnp.dot(ctx2, wo_ref[...],
                  preferred_element_type=jnp.float32) + bo_ref[...]      # (B*S, H)
    out_ref[...] = out.astype(out_ref.dtype)


def attention_forward(hidden_state, params):
    """hidden_state: (B, S, H) f32.  Returns (attention_output, attention_probs)."""
    B, S, H = hidden_state.shape
    wq, bq, wk, bk, wv, bv, wo, bo = params

    # Pack Q/K/V weights & biases once (outside the kernel).
    w_qkv = jnp.concatenate([wq, wk, wv], axis=1)   # (H, 3H)
    b_qkv = jnp.concatenate([bq, bk, bv], axis=1)   # (1, 3H)
    x2d = hidden_state.reshape(B * S, H)            # fold batch into M

    out_shapes = (
        jax.ShapeDtypeStruct((B * S, H), jnp.float32),
        jax.ShapeDtypeStruct((B, S, NUM_HEADS * S), jnp.float32),
    )

    out2d, probs_wide = pl.pallas_call(
        mha_kernel,
        out_shape=out_shapes,
        grid_spec=pltpu.PrefetchScalarGridSpec(
            num_scalar_prefetch=0,
            grid=(1,),                                # single invocation, no per-B loop
            in_specs=[
                pl.BlockSpec((B * S, H), lambda i: (0, 0)),       # x (flattened)
                pl.BlockSpec((H, 3 * H), lambda i: (0, 0)),       # packed Wqkv
                pl.BlockSpec((1, 3 * H), lambda i: (0, 0)),       # packed bqkv
                pl.BlockSpec((H, H), lambda i: (0, 0)),           # Wo
                pl.BlockSpec((1, H), lambda i: (0, 0)),           # bo
            ],
            out_specs=[
                pl.BlockSpec((B * S, H), lambda i: (0, 0)),
                pl.BlockSpec((B, S, NUM_HEADS * S), lambda i: (0, 0, 0)),
            ],
        ),
        compiler_params=pltpu.CompilerParams(
            dimension_semantics=("arbitrary",),
        ),
    )(x2d, w_qkv, b_qkv, wo, bo)

    attn_out = out2d.reshape(B, S, H)
    # (B, S, NH*S) -> (B, S, NH, S) -> (B, NH, S, S)  (cheap XLA reshuffle in wrapper)
    attn_probs = probs_wide.reshape(B, S, NUM_HEADS, S).transpose(0, 2, 1, 3)

    weights = attn_probs if IS_MASK else None
    return attn_out, weights


def init_params(key, hidden):
    """Deterministic synthetic parameters (shapes match torch Linear layers)."""
    ks = jax.random.split(key, 8)
    scale = 1.0 / math.sqrt(hidden)

    def w(k):
        return jax.random.normal(k, (hidden, hidden), jnp.float32) * scale

    def b(k):
        return jax.random.normal(k, (1, hidden), jnp.float32) * 0.01

    return (w(ks[0]), b(ks[1]),   # query
            w(ks[2]), b(ks[3]),   # key
            w(ks[4]), b(ks[5]),   # value
            w(ks[6]), b(ks[7]))   # out


def _reference(hidden_state, params):
    """Pure-JAX reference for sanity check."""
    wq, bq, wk, bk, wv, bv, wo, bo = params
    B, S, H = hidden_state.shape
    q = hidden_state @ wq + bq
    k = hidden_state @ wk + bk
    v = hidden_state @ wv + bv

    def split(x):  # (B,S,H) -> (B,nh,S,d)
        return x.reshape(B, S, NUM_HEADS, HEAD_DIM).transpose(0, 2, 1, 3)

    qh, kh, vh = split(q), split(k), split(v)
    scores = jnp.einsum("bhqd,bhkd->bhqk", qh, kh) / math.sqrt(HEAD_DIM)
    probs = jax.nn.softmax(scores, axis=-1)
    ctx = jnp.einsum("bhqk,bhkd->bhqd", probs, vh)
    ctx = ctx.transpose(0, 2, 1, 3).reshape(B, S, H)
    out = ctx @ wo + bo
    return out, probs


if __name__ == "__main__":
    key = jax.random.PRNGKey(0)
    k_x, k_p = jax.random.split(key)

    x = jax.random.normal(k_x, (BATCH, SEQ, HIDDEN), jnp.float32)
    params = init_params(k_p, HIDDEN)

    out, weights = attention_forward(x, params)
    out = jax.block_until_ready(out)
    weights = jax.block_until_ready(weights)

    ref_out, ref_w = _reference(x, params)
    assert jnp.allclose(out, ref_out, atol=1e-4, rtol=1e-4)
    assert jnp.allclose(weights, ref_w, atol=1e-4, rtol=1e-4)

    print("KERNEL_OK")
</pallas_src>

<mosaic_0001>
module attributes {stable_mosaic.version = 11 : i64} {
  func.func @mha_kernel(%arg0: i32, %arg1: memref<16x32xf32, #tpu.memory_space<vmem>>, %arg2: memref<32x96xf32, #tpu.memory_space<vmem>>, %arg3: memref<1x96xf32, #tpu.memory_space<vmem>>, %arg4: memref<32x32xf32, #tpu.memory_space<vmem>>, %arg5: memref<1x32xf32, #tpu.memory_space<vmem>>, %arg6: memref<16x32xf32, #tpu.memory_space<vmem>>, %arg7: memref<2x8x32xf32, #tpu.memory_space<vmem>>) attributes {dimension_semantics = [#tpu.dimension_semantics<arbitrary>], iteration_bounds = array<i64: 1>, scalar_prefetch = 0 : i64, scratch_operands = 0 : i64, tpu.core_type = #tpu.core_type<tc>, window_params = [{pipeline_mode = #tpu.pipeline_mode<synchronous>, transform_indices = @transform_0, window_bounds = array<i64: 16, 32>}, {pipeline_mode = #tpu.pipeline_mode<synchronous>, transform_indices = @transform_1, window_bounds = array<i64: 32, 96>}, {pipeline_mode = #tpu.pipeline_mode<synchronous>, transform_indices = @transform_2, window_bounds = array<i64: 1, 96>}, {pipeline_mode = #tpu.pipeline_mode<synchronous>, transform_indices = @transform_3, window_bounds = array<i64: 32, 32>}, {pipeline_mode = #tpu.pipeline_mode<synchronous>, transform_indices = @transform_4, window_bounds = array<i64: 1, 32>}, {pipeline_mode = #tpu.pipeline_mode<synchronous>, transform_indices = @transform_5, window_bounds = array<i64: 16, 32>}, {pipeline_mode = #tpu.pipeline_mode<synchronous>, transform_indices = @transform_6, window_bounds = array<i64: 2, 8, 32>}]} {
    %c0 = arith.constant 0 : index
    %c0_0 = arith.constant 0 : index
    %0 = vector.load %arg1[%c0, %c0_0] : memref<16x32xf32, #tpu.memory_space<vmem>>, vector<16x32xf32>
    %c0_1 = arith.constant 0 : index
    %c0_2 = arith.constant 0 : index
    %1 = vector.load %arg2[%c0_1, %c0_2] : memref<32x96xf32, #tpu.memory_space<vmem>>, vector<32x96xf32>
    %cst = arith.constant dense<0.000000e+00> : vector<16x96xf32>
    %2 = tpu.matmul %0, %1, %cst {dimension_numbers = #tpu.dot_dimension_numbers<[1], [0], [0], [1], [0, 0, 1, 1], [], []>} : vector<16x32xf32>, vector<32x96xf32>, vector<16x96xf32> -> vector<16x96xf32>
    %c0_3 = arith.constant 0 : index
    %c0_4 = arith.constant 0 : index
    %3 = vector.load %arg3[%c0_3, %c0_4] : memref<1x96xf32, #tpu.memory_space<vmem>>, vector<1x96xf32>
    %4 = vector.broadcast %3 : vector<1x96xf32> to vector<16x96xf32>
    %5 = arith.addf %2, %4 : vector<16x96xf32>
    %6 = vector.shape_cast %5 : vector<16x96xf32> to vector<2x8x96xf32>
    %7 = vector.extract_strided_slice %6 {offsets = [0, 0, 0], sizes = [2, 8, 8], strides = [1, 1, 1]} : vector<2x8x96xf32> to vector<2x8x8xf32>
    %8 = vector.extract_strided_slice %6 {offsets = [0, 0, 32], sizes = [2, 8, 8], strides = [1, 1, 1]} : vector<2x8x96xf32> to vector<2x8x8xf32>
    %9 = vector.extract_strided_slice %6 {offsets = [0, 0, 64], sizes = [2, 8, 8], strides = [1, 1, 1]} : vector<2x8x96xf32> to vector<2x8x8xf32>
    "tpu.trace_start"() <{level = 10 : i32, message = "bqd,bkd->bqk"}> : () -> ()
    %cst_5 = arith.constant dense<0.000000e+00> : vector<2x8x8xf32>
    %10 = tpu.matmul %7, %8, %cst_5 {dimension_numbers = #tpu.dot_dimension_numbers<[2], [2], [1], [1], [0, 0, 0, 1, 1, 1], [0], [0]>} : vector<2x8x8xf32>, vector<2x8x8xf32>, vector<2x8x8xf32> -> vector<2x8x8xf32>
    "tpu.trace_stop"() : () -> ()
    %cst_6 = arith.constant 0.353553385 : f32
    %11 = vector.broadcast %cst_6 : f32 to vector<2x8x8xf32>
    %12 = arith.mulf %10, %11 : vector<2x8x8xf32>
    %cst_7 = arith.constant dense<0xFF800000> : vector<2x8xf32>
    %13 = vector.multi_reduction <maximumf>, %12, %cst_7 [2] : vector<2x8x8xf32> to vector<2x8xf32>
    %14 = vector.shape_cast %13 : vector<2x8xf32> to vector<2x8x1xf32>
    %15 = vector.broadcast %14 : vector<2x8x1xf32> to vector<2x8x8xf32>
    %16 = arith.subf %12, %15 : vector<2x8x8xf32>
    %17 = math.exp %16 : vector<2x8x8xf32>
    %cst_8 = arith.constant dense<0.000000e+00> : vector<2x8xf32>
    %18 = vector.multi_reduction <add>, %17, %cst_8 [2] : vector<2x8x8xf32> to vector<2x8xf32>
    %19 = vector.shape_cast %18 : vector<2x8xf32> to vector<2x8x1xf32>
    %20 = tpu.reciprocal %19 : vector<2x8x1xf32> -> vector<2x8x1xf32>
    %21 = vector.broadcast %20 : vector<2x8x1xf32> to vector<2x8x8xf32>
    %22 = arith.mulf %17, %21 : vector<2x8x8xf32>
    "tpu.trace_start"() <{level = 10 : i32, message = "bqk,bkd->bqd"}> : () -> ()
    %cst_9 = arith.constant dense<0.000000e+00> : vector<2x8x8xf32>
    %23 = tpu.matmul %22, %9, %cst_9 {dimension_numbers = #tpu.dot_dimension_numbers<[2], [1], [1], [2], [0, 0, 0, 1, 1, 2], [0], [0]>} : vector<2x8x8xf32>, vector<2x8x8xf32>, vector<2x8x8xf32> -> vector<2x8x8xf32>
    "tpu.trace_stop"() : () -> ()
    %24 = vector.extract_strided_slice %6 {offsets = [0, 0, 8], sizes = [2, 8, 8], strides = [1, 1, 1]} : vector<2x8x96xf32> to vector<2x8x8xf32>
    %25 = vector.extract_strided_slice %6 {offsets = [0, 0, 40], sizes = [2, 8, 8], strides = [1, 1, 1]} : vector<2x8x96xf32> to vector<2x8x8xf32>
    %26 = vector.extract_strided_slice %6 {offsets = [0, 0, 72], sizes = [2, 8, 8], strides = [1, 1, 1]} : vector<2x8x96xf32> to vector<2x8x8xf32>
    "tpu.trace_start"() <{level = 10 : i32, message = "bqd,bkd->bqk"}> : () -> ()
    %cst_10 = arith.constant dense<0.000000e+00> : vector<2x8x8xf32>
    %27 = tpu.matmul %24, %25, %cst_10 {dimension_numbers = #tpu.dot_dimension_numbers<[2], [2], [1], [1], [0, 0, 0, 1, 1, 1], [0], [0]>} : vector<2x8x8xf32>, vector<2x8x8xf32>, vector<2x8x8xf32> -> vector<2x8x8xf32>
    "tpu.trace_stop"() : () -> ()
    %cst_11 = arith.constant 0.353553385 : f32
    %28 = vector.broadcast %cst_11 : f32 to vector<2x8x8xf32>
    %29 = arith.mulf %27, %28 : vector<2x8x8xf32>
    %cst_12 = arith.constant dense<0xFF800000> : vector<2x8xf32>
    %30 = vector.multi_reduction <maximumf>, %29, %cst_12 [2] : vector<2x8x8xf32> to vector<2x8xf32>
    %31 = vector.shape_cast %30 : vector<2x8xf32> to vector<2x8x1xf32>
    %32 = vector.broadcast %31 : vector<2x8x1xf32> to vector<2x8x8xf32>
    %33 = arith.subf %29, %32 : vector<2x8x8xf32>
    %34 = math.exp %33 : vector<2x8x8xf32>
    %cst_13 = arith.constant dense<0.000000e+00> : vector<2x8xf32>
    %35 = vector.multi_reduction <add>, %34, %cst_13 [2] : vector<2x8x8xf32> to vector<2x8xf32>
    %36 = vector.shape_cast %35 : vector<2x8xf32> to vector<2x8x1xf32>
    %37 = tpu.reciprocal %36 : vector<2x8x1xf32> -> vector<2x8x1xf32>
    %38 = vector.broadcast %37 : vector<2x8x1xf32> to vector<2x8x8xf32>
    %39 = arith.mulf %34, %38 : vector<2x8x8xf32>
    "tpu.trace_start"() <{level = 10 : i32, message = "bqk,bkd->bqd"}> : () -> ()
    %cst_14 = arith.constant dense<0.000000e+00> : vector<2x8x8xf32>
    %40 = tpu.matmul %39, %26, %cst_14 {dimension_numbers = #tpu.dot_dimension_numbers<[2], [1], [1], [2], [0, 0, 0, 1, 1, 2], [0], [0]>} : vector<2x8x8xf32>, vector<2x8x8xf32>, vector<2x8x8xf32> -> vector<2x8x8xf32>
    "tpu.trace_stop"() : () -> ()
    %41 = vector.extract_strided_slice %6 {offsets = [0, 0, 16], sizes = [2, 8, 8], strides = [1, 1, 1]} : vector<2x8x96xf32> to vector<2x8x8xf32>
    %42 = vector.extract_strided_slice %6 {offsets = [0, 0, 48], sizes = [2, 8, 8], strides = [1, 1, 1]} : vector<2x8x96xf32> to vector<2x8x8xf32>
    %43 = vector.extract_strided_slice %6 {offsets = [0, 0, 80], sizes = [2, 8, 8], strides = [1, 1, 1]} : vector<2x8x96xf32> to vector<2x8x8xf32>
    "tpu.trace_start"() <{level = 10 : i32, message = "bqd,bkd->bqk"}> : () -> ()
    %cst_15 = arith.constant dense<0.000000e+00> : vector<2x8x8xf32>
    %44 = tpu.matmul %41, %42, %cst_15 {dimension_numbers = #tpu.dot_dimension_numbers<[2], [2], [1], [1], [0, 0, 0, 1, 1, 1], [0], [0]>} : vector<2x8x8xf32>, vector<2x8x8xf32>, vector<2x8x8xf32> -> vector<2x8x8xf32>
    "tpu.trace_stop"() : () -> ()
    %cst_16 = arith.constant 0.353553385 : f32
    %45 = vector.broadcast %cst_16 : f32 to vector<2x8x8xf32>
    %46 = arith.mulf %44, %45 : vector<2x8x8xf32>
    %cst_17 = arith.constant dense<0xFF800000> : vector<2x8xf32>
    %47 = vector.multi_reduction <maximumf>, %46, %cst_17 [2] : vector<2x8x8xf32> to vector<2x8xf32>
    %48 = vector.shape_cast %47 : vector<2x8xf32> to vector<2x8x1xf32>
    %49 = vector.broadcast %48 : vector<2x8x1xf32> to vector<2x8x8xf32>
    %50 = arith.subf %46, %49 : vector<2x8x8xf32>
    %51 = math.exp %50 : vector<2x8x8xf32>
    %cst_18 = arith.constant dense<0.000000e+00> : vector<2x8xf32>
    %52 = vector.multi_reduction <add>, %51, %cst_18 [2] : vector<2x8x8xf32> to vector<2x8xf32>
    %53 = vector.shape_cast %52 : vector<2x8xf32> to vector<2x8x1xf32>
    %54 = tpu.reciprocal %53 : vector<2x8x1xf32> -> vector<2x8x1xf32>
    %55 = vector.broadcast %54 : vector<2x8x1xf32> to vector<2x8x8xf32>
    %56 = arith.mulf %51, %55 : vector<2x8x8xf32>
    "tpu.trace_start"() <{level = 10 : i32, message = "bqk,bkd->bqd"}> : () -> ()
    %cst_19 = arith.constant dense<0.000000e+00> : vector<2x8x8xf32>
    %57 = tpu.matmul %56, %43, %cst_19 {dimension_numbers = #tpu.dot_dimension_numbers<[2], [1], [1], [2], [0, 0, 0, 1, 1, 2], [0], [0]>} : vector<2x8x8xf32>, vector<2x8x8xf32>, vector<2x8x8xf32> -> vector<2x8x8xf32>
    "tpu.trace_stop"() : () -> ()
    %58 = vector.extract_strided_slice %6 {offsets = [0, 0, 24], sizes = [2, 8, 8], strides = [1, 1, 1]} : vector<2x8x96xf32> to vector<2x8x8xf32>
    %59 = vector.extract_strided_slice %6 {offsets = [0, 0, 56], sizes = [2, 8, 8], strides = [1, 1, 1]} : vector<2x8x96xf32> to vector<2x8x8xf32>
    %60 = vector.extract_strided_slice %6 {offsets = [0, 0, 88], sizes = [2, 8, 8], strides = [1, 1, 1]} : vector<2x8x96xf32> to vector<2x8x8xf32>
    "tpu.trace_start"() <{level = 10 : i32, message = "bqd,bkd->bqk"}> : () -> ()
    %cst_20 = arith.constant dense<0.000000e+00> : vector<2x8x8xf32>
    %61 = tpu.matmul %58, %59, %cst_20 {dimension_numbers = #tpu.dot_dimension_numbers<[2], [2], [1], [1], [0, 0, 0, 1, 1, 1], [0], [0]>} : vector<2x8x8xf32>, vector<2x8x8xf32>, vector<2x8x8xf32> -> vector<2x8x8xf32>
    "tpu.trace_stop"() : () -> ()
    %cst_21 = arith.constant 0.353553385 : f32
    %62 = vector.broadcast %cst_21 : f32 to vector<2x8x8xf32>
    %63 = arith.mulf %61, %62 : vector<2x8x8xf32>
    %cst_22 = arith.constant dense<0xFF800000> : vector<2x8xf32>
    %64 = vector.multi_reduction <maximumf>, %63, %cst_22 [2] : vector<2x8x8xf32> to vector<2x8xf32>
    %65 = vector.shape_cast %64 : vector<2x8xf32> to vector<2x8x1xf32>
    %66 = vector.broadcast %65 : vector<2x8x1xf32> to vector<2x8x8xf32>
    %67 = arith.subf %63, %66 : vector<2x8x8xf32>
    %68 = math.exp %67 : vector<2x8x8xf32>
    %cst_23 = arith.constant dense<0.000000e+00> : vector<2x8xf32>
    %69 = vector.multi_reduction <add>, %68, %cst_23 [2] : vector<2x8x8xf32> to vector<2x8xf32>
    %70 = vector.shape_cast %69 : vector<2x8xf32> to vector<2x8x1xf32>
    %71 = tpu.reciprocal %70 : vector<2x8x1xf32> -> vector<2x8x1xf32>
    %72 = vector.broadcast %71 : vector<2x8x1xf32> to vector<2x8x8xf32>
    %73 = arith.mulf %68, %72 : vector<2x8x8xf32>
    "tpu.trace_start"() <{level = 10 : i32, message = "bqk,bkd->bqd"}> : () -> ()
    %cst_24 = arith.constant dense<0.000000e+00> : vector<2x8x8xf32>
    %74 = tpu.matmul %73, %60, %cst_24 {dimension_numbers = #tpu.dot_dimension_numbers<[2], [1], [1], [2], [0, 0, 0, 1, 1, 2], [0], [0]>} : vector<2x8x8xf32>, vector<2x8x8xf32>, vector<2x8x8xf32> -> vector<2x8x8xf32>
    "tpu.trace_stop"() : () -> ()
    %75 = tpu.concatenate %22, %39, %56, %73 in 2 : vector<2x8x8xf32>, vector<2x8x8xf32>, vector<2x8x8xf32>, vector<2x8x8xf32> -> vector<2x8x32xf32>
    %c0_25 = arith.constant 0 : index
    %c0_26 = arith.constant 0 : index
    %c0_27 = arith.constant 0 : index
    %76 = vector.load %arg7[%c0_25, %c0_26, %c0_27] : memref<2x8x32xf32, #tpu.memory_space<vmem>>, vector<2x8x32xf32>
    tpu.vector_store %arg7[%c0_25, %c0_26, %c0_27], %75 {strides = array<i32>} : memref<2x8x32xf32, #tpu.memory_space<vmem>>, vector<2x8x32xf32>,
    %77 = tpu.concatenate %23, %40, %57, %74 in 2 : vector<2x8x8xf32>, vector<2x8x8xf32>, vector<2x8x8xf32>, vector<2x8x8xf32> -> vector<2x8x32xf32>
    %78 = vector.shape_cast %77 : vector<2x8x32xf32> to vector<16x32xf32>
    %c0_28 = arith.constant 0 : index
    %c0_29 = arith.constant 0 : index
    %79 = vector.load %arg4[%c0_28, %c0_29] : memref<32x32xf32, #tpu.memory_space<vmem>>, vector<32x32xf32>
    %cst_30 = arith.constant dense<0.000000e+00> : vector<16x32xf32>
    %80 = tpu.matmul %78, %79, %cst_30 {dimension_numbers = #tpu.dot_dimension_numbers<[1], [0], [0], [1], [0, 0, 1, 1], [], []>} : vector<16x32xf32>, vector<32x32xf32>, vector<16x32xf32> -> vector<16x32xf32>
    %c0_31 = arith.constant 0 : index
    %c0_32 = arith.constant 0 : index
    %81 = vector.load %arg5[%c0_31, %c0_32] : memref<1x32xf32, #tpu.memory_space<vmem>>, vector<1x32xf32>
    %82 = vector.broadcast %81 : vector<1x32xf32> to vector<16x32xf32>
    %83 = arith.addf %80, %82 : vector<16x32xf32>
    %c0_33 = arith.constant 0 : index
    %c0_34 = arith.constant 0 : index
    %84 = vector.load %arg6[%c0_33, %c0_34] : memref<16x32xf32, #tpu.memory_space<vmem>>, vector<16x32xf32>
    tpu.vector_store %arg6[%c0_33, %c0_34], %83 {strides = array<i32>} : memref<16x32xf32, #tpu.memory_space<vmem>>, vector<16x32xf32>,
    return
  }
  func.func @transform_0(%arg0: i32) -> (i32, i32) {
    %c0_i32 = arith.constant 0 : i32
    %c0_i32_0 = arith.constant 0 : i32
    %c0_i32_1 = arith.constant 0 : i32
    return %c0_i32, %c0_i32_0 : i32, i32
  }
  func.func @transform_1(%arg0: i32) -> (i32, i32) {
    %c0_i32 = arith.constant 0 : i32
    %c0_i32_0 = arith.constant 0 : i32
    %c0_i32_1 = arith.constant 0 : i32
    return %c0_i32, %c0_i32_0 : i32, i32
  }
  func.func @transform_2(%arg0: i32) -> (i32, i32) {
    %c0_i32 = arith.constant 0 : i32
    %c0_i32_0 = arith.constant 0 : i32
    %c0_i32_1 = arith.constant 0 : i32
    return %c0_i32, %c0_i32_0 : i32, i32
  }
  func.func @transform_3(%arg0: i32) -> (i32, i32) {
    %c0_i32 = arith.constant 0 : i32
    %c0_i32_0 = arith.constant 0 : i32
    %c0_i32_1 = arith.constant 0 : i32
    return %c0_i32, %c0_i32_0 : i32, i32
  }
  func.func @transform_4(%arg0: i32) -> (i32, i32) {
    %c0_i32 = arith.constant 0 : i32
    %c0_i32_0 = arith.constant 0 : i32
    %c0_i32_1 = arith.constant 0 : i32
    return %c0_i32, %c0_i32_0 : i32, i32
  }
  func.func @transform_5(%arg0: i32) -> (i32, i32) {
    %c0_i32 = arith.constant 0 : i32
    %c0_i32_0 = arith.constant 0 : i32
    %c0_i32_1 = arith.constant 0 : i32
    return %c0_i32, %c0_i32_0 : i32, i32
  }
  func.func @transform_6(%arg0: i32) -> (i32, i32, i32) {
    %c0_i32 = arith.constant 0 : i32
    %c0_i32_0 = arith.constant 0 : i32
    %c0_i32_1 = arith.constant 0 : i32
    %c0_i32_2 = arith.constant 0 : i32
    return %c0_i32, %c0_i32_0, %c0_i32_1 : i32, i32, i32
  }
}

</mosaic_0001>

<bundles_post_ra>
// kernel: tpu_custom_call.1
= control target key start
LH: loop header
LB: loop body
LE: loop exit
PB: predicated region body
PF: predicated region fallthrough
CT: control target
= control target key end

     0   :  { %12 = vsyncpa [#allocation3], 0  ;;  %s1333_s0 = inlined_call_operand.hbm [shape: f32[16,32], index: 0, kind: input, shape index: {}]   ;;  %s1334_s1 = inlined_call_operand.hbm [shape: f32[32,96], index: 1, kind: input, shape index: {}]   ;;  %s1335_s2 = inlined_call_operand.vmem [shape: f32[1,96], index: 2, kind: input, shape index: {}]   ;;  %s1336_s3 = inlined_call_operand.hbm [shape: f32[32,32], index: 3, kind: input, shape index: {}]   ;;  %s1337_s4 = inlined_call_operand.vmem [shape: f32[1,32], index: 4, kind: input, shape index: {}]   ;;  %s1338_s5 = inlined_call_operand.hbm [shape: f32[16,32], index: 5, kind: output, shape index: {0}]   ;;  %s1339_s6 = inlined_call_operand.hbm [shape: f32[2,8,32], index: 6, kind: output, shape index: {1}]  }
   0x1   :  { %13 = vsyncpa [#allocation6], 0 }
   0x2   :  { %14 = vsyncpa [#allocation4], 0 }
   0x3   :  { %15 = vsyncpa [#allocation10], 0  ;;  %s33_s23 = sshll.u32 %s1334_s1, 4  ;;  %s1092_s24 = smov [#allocation5]   ;;  %s34_s23 = int_to_ptr.hbm [resolvable:$true] %s33_s23 }
   0x4   :  { %s35_s25 = sshll.u32 %s1092_s24, 4  ;;  %s20_s28 = sshll.u32 %s1333_s0, 4  ;;  %s36_s25 = int_to_ptr.vmem [resolvable:$true] %s35_s25  ;;  %s21_s28 = int_to_ptr.hbm [resolvable:$true] %s20_s28 }
   0x5   :  { %s1093_s29 = smov 128   ;;  %s1094_s30 = smov 8  }
   0x6   :  { %41 = dma.hbm_to_vmem [thread:$0]  %s34_s23, 512, %s36_s25, [#allocation6], %s1093_s29, %s1093_s29, %s1094_s30  }
   0x7   :  { %s1095_s7 = smov [#allocation2]   ;;  %s48_s1 = sshll.u32 %s1336_s3, 4  ;;  %s49_s1 = int_to_ptr.hbm [resolvable:$true] %s48_s1 }
   0x8   :  { %s22_s8 = sshll.u32 %s1095_s7, 4  ;;  %s1096_s0 = smov [#allocation7]   ;;  %s23_s8 = int_to_ptr.vmem [resolvable:$true] %s22_s8 }
   0x9   :  { %28 = dma.hbm_to_vmem [thread:$0]  %s21_s28, 256, %s23_s8, [#allocation3], %s1093_s29, %s1093_s29, %s1094_s30  }
   0xa   :  { %s50_s11 = sshll.u32 %s1096_s0, 4  ;;  %s51_s11 = int_to_ptr.vmem [resolvable:$true] %s50_s11 }
   0xb   :  { %56 = dma.hbm_to_vmem [thread:$0]  %s49_s1, 512, %s51_s11, [#allocation6], %s1093_s29, %s1093_s29, %s1094_s30  }
   0xc   :  { %1084 = dma.done.wait [#allocation3], 256  }
   0xd   :  { %1085 = vsyncadd [#allocation3], 4294967040 }
   0xe   :  { %1086 = dma.done.wait [#allocation6], 1024  }
   0xf   :  { %1087 = vsyncadd [#allocation6], 4294966272  ;;  %v76_v0 = vld [vmem:[#allocation5 + $0x18] sm:$0xff]  ;;  %v75_v1 = vld [vmem:[#allocation5 + $0x10] sm:$0xff]  ;;  %vm81_vm0 = vcmask 261120   ;;  %s1097_s13 = smov 88  }
  0x10   :  { %100 = vmatpush.msra.mxu0 %v76_v0  ;;  %v74_v2 = vld [vmem:[#allocation5 + $0x8] sm:$0xff]  ;;  %v73_v3 = vld [vmem:[#allocation5] sm:$0xff]  ;;  %v71_v4 = vld [vmem:[#allocation2] sm:$0xff]  ;;  %s1098_s14 = smov 96   ;;  %s1099_s15 = smov 80   ;;  %vm114_vm1 = vcmask 64512  }
  0x11   :  { %v72_v5 = vld [vmem:[#allocation2 + $0x8] sm:$0xff]  ;;  %v930_v6 = vld [vmem:[%s1335_s2] ss:$0 sm:$0xff]  ;;  %s1100_s2 = smov 120   ;;  %s1101_s16 = smov 72  }
  0x12   :  { %101 = vmatpush.msra.mxu0 %v75_v1  ;;  %s1102_s17 = smov 112   ;;  %s1103_s18 = smov 104  }
  0x13   :  { %s1104_s19 = smov 64   ;;  %s1105_s20 = smov 56  }
  0x14   :  { %102 = vmatpush.msra.mxu0 %v74_v2  ;;  %s1106_s21 = smov 48   ;;  %s1107_s22 = smov 40  }
  0x15   :  { %s1108_s23 = smov 16   ;;  %s1109_s24 = smov 24  }
  0x16   :  { %103 = vmatpush.msra.mxu0 %v73_v3  ;;  %s1110_s25 = smov [#allocation9]   ;;  %s858_s7 = sshll.u32 %s1339_s6, 4  ;;  %s859_s7 = int_to_ptr.hbm [resolvable:$true] %s858_s7 }
  0x17   :  { %877 = vmatmul.msk.f32.vlgmr.msra.gmra.mxu0 %vm81_vm0, %v71_v4  ;;  %s856_s26 = sshll.u32 %s1110_s25, 4  ;;  %s1111_s6 = smov [#allocation8]   ;;  %s857_s26 = int_to_ptr.vmem [resolvable:$true] %s856_s26 }
  0x18   :  { %s843_s10 = sshll.u32 %s1111_s6, 4  ;;  %s845_s11 = sshll.u32 %s1338_s5, 4  ;;  %s844_s10 = int_to_ptr.vmem [resolvable:$true] %s843_s10  ;;  %s846_s11 = int_to_ptr.hbm [resolvable:$true] %s845_s11 }
  0x1f   :  { %878 = vmatmul.msk.f32.gmra.mxu0 %vm81_vm0, %v72_v5 }
  0x94   :  { %v105_v7 = vpop.f32.mrf.mxu0 }
  0x95   :  { %v1170_v8 = vadd.f32 %v930_v6, %v105_v7 }
  0x97   :  { %270 = vrot.lane.b32.xlu2 %v1170_v8, %s1097_s13  ;;  %112 = vrot.lane.b32.xlu0 %v1170_v8, %s1098_s14 }
  0x9c   :  { %v108_v9 = vpop.f32.mrf.mxu0 }
  0x9d   :  { %v1174_v10 = vadd.f32 %v930_v6, %v108_v9 }
  0x9f   :  { %298 = vrot.lane.b32.xlu1 %v1174_v10, %s1097_s13  ;;  %428 = vrot.lane.b32.xlu2 %v1170_v8, %s1099_s15  ;;  %v925_v49 = vpack.i.bf16 %v1174_v10, %v1170_v8 }
  0xa0   :  { %140 = vrot.lane.b32.xlu0 %v1174_v10, %s1098_s14 }
  0xa7   :  { %296 = vrot.lane.b32.xlu1 %v1174_v10, %s1100_s2  ;;  %586 = vrot.lane.b32.xlu2 %v1170_v8, %s1101_s16 }
  0xa8   :  { %268 = vrot.lane.b32.xlu0 %v1170_v8, %s1100_s2 }
  0xaf   :  { %426 = vrot.lane.b32.xlu1 %v1170_v8, %s1102_s17  ;;  %454 = vrot.lane.b32.xlu2 %v1174_v10, %s1102_s17 }
  0xb0   :  { %584 = vrot.lane.b32.xlu0 %v1170_v8, %s1103_s18 }
  0xb7   :  { %456 = vrot.lane.b32.xlu1 %v1174_v10, %s1099_s15 }
  0xb8   :  { %614 = vrot.lane.b32.xlu0 %v1174_v10, %s1101_s16 }
  0xbf   :  { %612 = vrot.lane.b32.xlu1 %v1174_v10, %s1103_s18 }
  0xf1   :  { %v271_v11 = vpop.permute.xlu2 %270 }
  0xf9   :  { %v429_v13 = vpop.permute.xlu2 %428 }
 0x101   :  { %v587_v17 = vpop.permute.xlu2 %586 }
 0x109   :  { %v113_v12 = vpop.permute.xlu0 %112  ;;  %v455_v23 = vpop.permute.xlu2 %454 }
 0x10a   :  { %879 = vmatpush.xpose.msk.msra.mxu1 %vm114_vm1, %v113_v12 }
 0x10d   :  { %880 = vmatmul.msk.f32.vlgmr.msra.gmra.mxu1 %vm114_vm1, %v1170_v8 }
 0x10e   :  { %885 = vmatpush.xpose.msk.msrb.mxu1 %vm114_vm1, %v271_v11 }
 0x111   :  { %v299_v14 = vpop.permute.xlu1 %298 }
 0x112   :  { %v141_v15 = vpop.permute.xlu0 %140  ;;  %887 = vmatpush.xpose.msk.msra.mxu2 %vm114_vm1, %v299_v14 }
 0x113   :  { %881 = vmatpush.xpose.msk.msrb.mxu0 %vm114_vm1, %v141_v15 }
 0x116   :  { %891 = vmatpush.xpose.msk.msrb.mxu2 %vm114_vm1, %v429_v13  ;;  %882 = vmatmul.msk.f32.vlgmr.msrb.gmra.mxu0 %vm114_vm1, %v1174_v10 }
 0x119   :  { %v297_v16 = vpop.permute.xlu1 %296 }
 0x11a   :  { %v269_v18 = vpop.permute.xlu0 %268  ;;  %888 = vmatmul.msk.f32.vlgmr.msra.gmra.mxu2 %vm114_vm1, %v297_v16 }
 0x11b   :  { %886 = vmatmul.msk.f32.vlgmr.msrb.gmra.mxu1 %vm114_vm1, %v269_v18  ;;  %897 = vmatpush.xpose.msk.msra.mxu2 %vm114_vm1, %v587_v17 }
 0x121   :  { %v427_v19 = vpop.permute.xlu1 %426 }
 0x122   :  { %v585_v20 = vpop.permute.xlu0 %584  ;;  %892 = vmatmul.msk.f32.vlgmr.msrb.gmra.mxu2 %vm114_vm1, %v427_v19 }
 0x129   :  { %v457_v21 = vpop.permute.xlu1 %456 }
 0x12a   :  { %v615_v22 = vpop.permute.xlu0 %614  ;;  %893 = vmatpush.xpose.msk.msra.mxu0 %vm114_vm1, %v457_v21  ;;  %898 = vmatmul.msk.f32.vlgmr.msra.gmra.mxu2 %vm114_vm1, %v585_v20 }
 0x12d   :  { %894 = vmatmul.msk.f32.vlgmr.msra.gmra.mxu0 %vm114_vm1, %v455_v23 }
 0x12e   :  { %899 = vmatpush.xpose.msk.msrb.mxu0 %vm114_vm1, %v615_v22 }
 0x131   :  { %v613_v24 = vpop.permute.xlu1 %612 }
 0x135   :  { %900 = vmatmul.msk.f32.vlgmr.msrb.gmra.mxu0 %vm114_vm1, %v613_v24 }
 0x18a   :  { %v136_v25 = vpop.f32.mrf.mxu1 }
 0x18b   :  { %v166_v26 = vmul.f32 0.35355338, %v136_v25 }
 0x18d   :  { %v168_v27 = vsel %vm114_vm1, %v166_v26, -inf }
 0x18e   :  { %169 = vmax.xlane.f32.xlu2 %v168_v27 }
 0x193   :  { %v163_v28 = vpop.f32.mrf.mxu0 }
 0x194   :  { %v167_v29 = vmul.f32 0.35355338, %v163_v28 }
 0x196   :  { %v171_v30 = vsel %vm114_vm1, %v167_v29, -inf }
 0x197   :  { %172 = vmax.xlane.f32.xlu0 %v171_v30 }
 0x198   :  { %v293_v31 = vpop.f32.mrf.mxu1 }
 0x199   :  { %v324_v32 = vmul.f32 0.35355338, %v293_v31 }
 0x19b   :  { %v326_v33 = vsel %vm114_vm1, %v324_v32, -inf }
 0x19c   :  { %327 = vmax.xlane.f32.xlu1 %v326_v33 }
 0x19d   :  { %v321_v34 = vpop.f32.mrf.mxu2 }
 0x19e   :  { %v325_v35 = vmul.f32 0.35355338, %v321_v34 }
 0x1a0   :  { %v329_v36 = vsel %vm114_vm1, %v325_v35, -inf }
 0x1a1   :  { %330 = vmax.xlane.f32.xlu2 %v329_v36 }
 0x1a5   :  { %v451_v37 = vpop.f32.mrf.mxu2 }
 0x1a6   :  { %v482_v38 = vmul.f32 0.35355338, %v451_v37 }
 0x1a8   :  { %v484_v39 = vsel %vm114_vm1, %v482_v38, -inf }
 0x1a9   :  { %485 = vmax.xlane.f32.xlu2 %v484_v39 }
 0x1aa   :  { %v479_v40 = vpop.f32.mrf.mxu0 }
 0x1ab   :  { %v483_v41 = vmul.f32 0.35355338, %v479_v40 }
 0x1ad   :  { %v609_v42 = vpop.f32.mrf.mxu2  ;;  %v487_v43 = vsel %vm114_vm1, %v483_v41, -inf }
 0x1ae   :  { %v1212_v44 = vmul.f32 0.35355338, %v609_v42  ;;  %488 = vmax.xlane.f32.xlu1 %v487_v43 }
 0x1b0   :  { %v642_v45 = vsel %vm114_vm1, %v1212_v44, -inf }
 0x1b1   :  { %643 = vmax.xlane.f32.xlu0 %v642_v45 }
 0x1b2   :  { %v637_v46 = vpop.f32.mrf.mxu0 }
 0x1b3   :  { %v641_v47 = vmul.f32 0.35355338, %v637_v46 }
 0x1b5   :  { %v645_v48 = vsel %vm114_vm1, %v641_v47, -inf }
 0x1b6   :  { %646 = vmax.xlane.f32.xlu2 %v645_v48 }
 0x1c5   :  { %926 = vrot.lane.b32.xlu0 %v925_v49, %s1104_s19 }
 0x1ce   :  { %374 = vrot.lane.b32.xlu2 %v1170_v8, %s1105_s20 }
 0x201   :  { %v170_v50 = vpop.xlane.xlu2 %169 }
 0x202   :  { %v174_v51 = vsub.f32 %v166_v26, %v170_v50 }
 0x204   :  { %v176_v52 = vmul.f32 1.442695, %v174_v51 }
 0x206   :  { %932 = vpow2.f32 %v176_v52 }
 0x20a   :  { %v173_v53 = vpop.xlane.xlu0 %172 }
 0x20b   :  { %v175_v54 = vsub.f32 %v167_v29, %v173_v53 }
 0x20c   :  { %v1221_v55 = vpop.eup %932 }
 0x20d   :  { %v178_v56 = vmul.f32 1.442695, %v175_v54  ;;  %v180_v57 = vsel %vm114_vm1, %v1221_v55, 0.0 }
 0x20e   :  { %181 = vadd.xlane.f32.xlu0 %v180_v57 }
 0x20f   :  { %934 = vpow2.f32 %v178_v56  ;;  %v328_v58 = vpop.xlane.xlu1 %327 }
 0x210   :  { %v332_v59 = vsub.f32 %v324_v32, %v328_v58 }
 0x212   :  { %v334_v60 = vmul.f32 1.442695, %v332_v59 }
 0x214   :  { %936 = vpow2.f32 %v334_v60  ;;  %v331_v61 = vpop.xlane.xlu2 %330 }
 0x215   :  { %v1225_v62 = vpop.eup %934  ;;  %v333_v63 = vsub.f32 %v325_v35, %v331_v61 }
 0x216   :  { %v183_v0 = vsel %vm114_vm1, %v1225_v62, 0.0 }
 0x217   :  { %v336_v1 = vmul.f32 1.442695, %v333_v63  ;;  %184 = vadd.xlane.f32.xlu1 %v183_v0 }
 0x219   :  { %938 = vpow2.f32 %v336_v1 }
 0x21a   :  { %v1229_v2 = vpop.eup %936 }
 0x21b   :  { %v338_v3 = vsel %vm114_vm1, %v1229_v2, 0.0 }
 0x21c   :  { %339 = vadd.xlane.f32.xlu2 %v338_v3  ;;  %v486_v5 = vpop.xlane.xlu2 %485 }
 0x21d   :  { %v490_v11 = vsub.f32 %v482_v38, %v486_v5 }
 0x21f   :  { %v1233_v4 = vpop.eup %938  ;;  %v492_v13 = vmul.f32 1.442695, %v490_v11 }
 0x220   :  { %v341_v9 = vsel %vm114_vm1, %v1233_v4, 0.0 }
 0x221   :  { %v489_v6 = vpop.xlane.xlu1 %488 }
 0x222   :  { %v491_v7 = vsub.f32 %v483_v41, %v489_v6  ;;  %532 = vrot.lane.b32.xlu0 %v1170_v8, %s1106_s21 }
 0x224   :  { %v494_v12 = vmul.f32 1.442695, %v491_v7  ;;  %342 = vadd.xlane.f32.xlu2 %v341_v9  ;;  %v644_v18 = vpop.xlane.xlu0 %643 }
 0x225   :  { %v648_v21 = vsub.f32 %v1212_v44, %v644_v18 }
 0x226   :  { %940 = vpow2.f32 %v494_v12 }
 0x227   :  { %942 = vpow2.f32 %v492_v13  ;;  %v650_v24 = vmul.f32 1.442695, %v648_v21 }
 0x229   :  { %v647_v14 = vpop.xlane.xlu2 %646 }
 0x22a   :  { %400 = vrot.lane.b32.xlu0 %v1174_v10, %s1105_s20  ;;  %v649_v16 = vsub.f32 %v641_v47, %v647_v14 }
 0x22c   :  { %v1240_v15 = vpop.eup %940  ;;  %v652_v19 = vmul.f32 1.442695, %v649_v16 }
 0x22d   :  { %v499_v17 = vsel %vm114_vm1, %v1240_v15, 0.0  ;;  %v1244_v20 = vpop.eup %942 }
 0x22e   :  { %500 = vadd.xlane.f32.xlu1 %v499_v17  ;;  %944 = vpow2.f32 %v652_v19  ;;  %v496_v22 = vsel %vm114_vm1, %v1244_v20, 0.0 }
 0x22f   :  { %946 = vpow2.f32 %v650_v24 }
 0x231   :  { %v375_v32 = vpop.permute.xlu2 %374 }
 0x232   :  { %558 = vrot.lane.b32.xlu0 %v1174_v10, %s1106_s21 }
 0x234   :  { %v1250_v27 = vpop.eup %944 }
 0x235   :  { %v657_v28 = vsel %vm114_vm1, %v1250_v27, 0.0  ;;  %v1255_v29 = vpop.eup %946 }
 0x236   :  { %497 = vadd.xlane.f32.xlu1 %v496_v22  ;;  %v654_v30 = vsel %vm114_vm1, %v1255_v29, 0.0 }
 0x237   :  { %v927_v23 = vpop.permute.xlu0 %926 }
 0x238   :  { %v928_v25 = vunpack.i.l.bf16 %v927_v23  ;;  %v929_v26 = vunpack.i.h.bf16 %v927_v23 }
 0x23a   :  { %237 = vmatpush.msra.mxu3 %v928_v25 }
 0x23c   :  { %263 = vmatpush.msrb.mxu3 %v929_v26  ;;  %716 = vrot.lane.b32.xlu2 %v1174_v10, %s1107_s22 }
 0x23e   :  { %658 = vadd.xlane.f32.xlu1 %v657_v28 }
 0x246   :  { %655 = vadd.xlane.f32.xlu1 %v654_v30 }
 0x25f   :  { %690 = vrot.lane.b32.xlu1 %v1170_v8, %s1107_s22 }
 0x281   :  { %v182_v31 = vpop.xlane.xlu0 %181 }
 0x282   :  { %948 = vrcp.f32 %v182_v31  ;;  %v197_v37 = vand.u32 2147483648, %v182_v31  ;;  %v195_v38 = vand.u32 2147483647, %v182_v31  ;;  %vm191_vm3 = vweird.f32 %v182_v31 }
 0x284   :  { %v198_v42 = vor.u32 1.1754944e-38, %v197_v37  ;;  %vm196_vm5 = vcmp.eq.f32.partialorder %v195_v38, 8.507059e+37 }
 0x288   :  { %v949_v33 = vpop.eup %948 }
 0x289   :  { %v187_v34 = vmul.f32 %v949_v33, %v182_v31  ;;  %vm192_vm2 = vweird.f32 %v949_v33 }
 0x28a   :  { %v185_v35 = vpop.xlane.xlu1 %184  ;;  %vm193_vm4 = vmor %vm191_vm3, %vm192_vm2 }
 0x28b   :  { %v188_v36 = vsub.f32 1.0, %v187_v34  ;;  %950 = vrcp.f32 %v185_v35  ;;  %v211_v48 = vand.u32 2147483648, %v185_v35  ;;  %v209_v51 = vand.u32 2147483647, %v185_v35 }
 0x28c   :  { %vm205_vm7 = vweird.f32 %v185_v35 }
 0x28d   :  { %v189_v10 = vmul.f32 %v949_v33, %v188_v36  ;;  %v212_v56 = vor.u32 1.1754944e-38, %v211_v48  ;;  %vm210_vm9 = vcmp.eq.f32.partialorder %v209_v51, 8.507059e+37 }
 0x28f   :  { %v340_v39 = vpop.xlane.xlu2 %339  ;;  %v190_v40 = vadd.f32 %v949_v33, %v189_v10 }
 0x290   :  { %952 = vrcp.f32 %v340_v39  ;;  %v355_v59 = vand.u32 2147483648, %v340_v39  ;;  %v353_v61 = vand.u32 2147483647, %v340_v39  ;;  %vm349_vm11 = vweird.f32 %v340_v39 }
 0x291   :  { %v951_v41 = vpop.eup %950  ;;  %v194_v8 = vsel %vm193_vm4, %v949_v33, %v190_v40 }
 0x292   :  { %v201_v43 = vmul.f32 %v951_v41, %v185_v35  ;;  %v199_v44 = vsel %vm196_vm5, %v198_v42, %v194_v8  ;;  %vm206_vm6 = vweird.f32 %v951_v41  ;;  %v356_v6 = vor.u32 1.1754944e-38, %v355_v59 }
 0x293   :  { %v1261_v47 = vmul.f32 %v1221_v55, %v199_v44  ;;  %vm207_vm8 = vmor %vm205_vm7, %vm206_vm6  ;;  %vm354_vm13 = vcmp.eq.f32.partialorder %v353_v61, 8.507059e+37 }
 0x294   :  { %v202_v45 = vsub.f32 1.0, %v201_v43  ;;  %v533_v46 = vpop.permute.xlu0 %532 }
 0x295   :  { %883 = vmatmul.msk.f32.vlgmr.msra.gmra.mxu3 %vm114_vm1, %v1261_v47 }
 0x296   :  { %v953_v49 = vpop.eup %952  ;;  %v203_v50 = vmul.f32 %v951_v41, %v202_v45  ;;  %395 = vmatpush.msra.mxu3 %v375_v32 }
 0x297   :  { %v345_v52 = vmul.f32 %v953_v49, %v340_v39  ;;  %v343_v53 = vpop.xlane.xlu2 %342  ;;  %vm350_vm10 = vweird.f32 %v953_v49 }
 0x298   :  { %v204_v54 = vadd.f32 %v951_v41, %v203_v50  ;;  %954 = vrcp.f32 %v343_v53  ;;  %vm351_vm12 = vmor %vm349_vm11, %vm350_vm10  ;;  %v369_v13 = vand.u32 2147483648, %v343_v53  ;;  %v367_v14 = vand.u32 2147483647, %v343_v53 }
 0x299   :  { %v346_v57 = vsub.f32 1.0, %v345_v52  ;;  %vm363_vm15 = vweird.f32 %v343_v53 }
 0x29a   :  { %v208_v55 = vsel %vm207_vm8, %v951_v41, %v204_v54  ;;  %v370_v19 = vor.u32 1.1754944e-38, %v369_v13  ;;  %vm368_vm3 = vcmp.eq.f32.partialorder %v367_v14, 8.507059e+37 }
 0x29b   :  { %v347_v58 = vmul.f32 %v953_v49, %v346_v57  ;;  %v213_v60 = vsel %vm210_vm9, %v212_v56, %v208_v55 }
 0x29c   :  { %v401_v63 = vpop.permute.xlu0 %400  ;;  %v1266_v0 = vmul.f32 %v1225_v62, %v213_v60 }
 0x29d   :  { %v348_v1 = vadd.f32 %v953_v49, %v347_v58  ;;  %421 = vmatpush.msra.mxu1 %v401_v63 }
 0x29e   :  { %v955_v3 = vpop.eup %954  ;;  %884 = vmatmul.msk.f32.vlgmr.msrb.gmra.mxu3 %vm114_vm1, %v1266_v0 }
 0x29f   :  { %v352_v5 = vsel %vm351_vm12, %v953_v49, %v348_v1  ;;  %v359_v7 = vmul.f32 %v955_v3, %v343_v53  ;;  %553 = vmatpush.msrb.mxu3 %v533_v46  ;;  %vm364_vm14 = vweird.f32 %v955_v3 }
 0x2a0   :  { %v357_v9 = vsel %vm354_vm13, %v356_v6, %v352_v5  ;;  %vm365_vm2 = vmor %vm363_vm15, %vm364_vm14 }
 0x2a1   :  { %v360_v11 = vsub.f32 1.0, %v359_v7  ;;  %v501_v12 = vpop.xlane.xlu1 %500  ;;  %v1271_v17 = vmul.f32 %v1229_v2, %v357_v9  ;;  %v717_v2 = vpop.permute.xlu2 %716 }
 0x2a2   :  { %956 = vrcp.f32 %v501_v12  ;;  %v527_v30 = vand.u32 2147483648, %v501_v12  ;;  %v525_v32 = vand.u32 2147483647, %v501_v12  ;;  %vm521_vm5 = vweird.f32 %v501_v12 }
 0x2a3   :  { %v361_v62 = vmul.f32 %v955_v3, %v360_v11 }
 0x2a4   :  { %v559_v16 = vpop.permute.xlu0 %558  ;;  %v528_v35 = vor.u32 1.1754944e-38, %v527_v30  ;;  %vm526_vm7 = vcmp.eq.f32.partialorder %v525_v32, 8.507059e+37 }
 0x2a5   :  { %v362_v18 = vadd.f32 %v955_v3, %v361_v62  ;;  %579 = vmatpush.msrb.mxu1 %v559_v16 }
 0x2a6   :  { %889 = vmatmul.msk.f32.vlgmr.msra.gmra.mxu3 %vm114_vm1, %v1271_v17 }
 0x2a7   :  { %v366_v21 = vsel %vm365_vm2, %v955_v3, %v362_v18 }
 0x2a8   :  { %v957_v22 = vpop.eup %956  ;;  %v371_v23 = vsel %vm368_vm3, %v370_v19, %v366_v21  ;;  %v803_v19 = vld [vmem:[#allocation7 + $0x18] sm:$0xff]  ;;  %v802_v21 = vld [vmem:[#allocation7 + $0x10] sm:$0xff] }
 0x2a9   :  { %v517_v24 = vmul.f32 %v957_v22, %v501_v12  ;;  %v498_v25 = vpop.xlane.xlu1 %497  ;;  %v1276_v26 = vmul.f32 %v1233_v4, %v371_v23  ;;  %vm522_vm4 = vweird.f32 %v957_v22  ;;  %826 = vmatpush.msrb.mxu2 %v803_v19  ;;  %v800_v23 = vld [vmem:[#allocation7] sm:$0xff] }
 0x2aa   :  { %958 = vrcp.f32 %v498_v25  ;;  %vm523_vm6 = vmor %vm521_vm5, %vm522_vm4  ;;  %v513_v40 = vand.u32 2147483648, %v498_v25  ;;  %v511_v42 = vand.u32 2147483647, %v498_v25  ;;  %vm507_vm9 = vweird.f32 %v498_v25 }
 0x2ab   :  { %v518_v28 = vsub.f32 1.0, %v517_v24  ;;  %890 = vmatmul.msk.f32.vlgmr.msra.gmra.mxu1 %vm114_vm1, %v1276_v26  ;;  %827 = vmatpush.msrb.mxu2 %v802_v21 }
 0x2ac   :  { %737 = vmatpush.msra.mxu1 %v717_v2  ;;  %v514_v44 = vor.u32 1.1754944e-38, %v513_v40  ;;  %vm512_vm11 = vcmp.eq.f32.partialorder %v511_v42, 8.507059e+37 }
 0x2ad   :  { %v519_v31 = vmul.f32 %v957_v22, %v518_v28 }
 0x2af   :  { %v520_v33 = vadd.f32 %v957_v22, %v519_v31 }
 0x2b0   :  { %v959_v34 = vpop.eup %958 }
 0x2b1   :  { %v524_v36 = vsel %vm523_vm6, %v957_v22, %v520_v33  ;;  %v503_v4 = vmul.f32 %v959_v34, %v498_v25  ;;  %v659_v10 = vpop.xlane.xlu1 %658  ;;  %vm508_vm8 = vweird.f32 %v959_v34  ;;  %v801_v22 = vld [vmem:[#allocation7 + $0x8] sm:$0xff]  ;;  %vm762_vm6 = vcmask 130048  }
 0x2b2   :  { %v529_v37 = vsel %vm526_vm7, %v528_v35, %v524_v36  ;;  %960 = vrcp.f32 %v659_v10  ;;  %vm509_vm10 = vmor %vm507_vm9, %vm508_vm8  ;;  %v685_v51 = vand.u32 2147483648, %v659_v10  ;;  %v683_v53 = vand.u32 2147483647, %v659_v10  ;;  %828 = vmatpush.msrb.mxu2 %v801_v22 }
 0x2b3   :  { %v504_v38 = vsub.f32 1.0, %v503_v4  ;;  %v1281_v39 = vmul.f32 %v1240_v15, %v529_v37  ;;  %vm679_vm13 = vweird.f32 %v659_v10  ;;  %vm765_vm7 = vcmask 195584  }
 0x2b4   :  { %v686_v57 = vor.u32 1.1754944e-38, %v685_v51  ;;  %vm684_vm15 = vcmp.eq.f32.partialorder %v683_v53, 8.507059e+37  ;;  %829 = vmatpush.msrb.mxu2 %v800_v23 }
 0x2b5   :  { %v505_v41 = vmul.f32 %v959_v34, %v504_v38  ;;  %896 = vmatmul.msk.f32.vlgmr.msrb.gmra.mxu1 %vm114_vm1, %v1281_v39 }
 0x2b7   :  { %v506_v8 = vadd.f32 %v959_v34, %v505_v41 }
 0x2b8   :  { %v961_v43 = vpop.eup %960 }
 0x2b9   :  { %v510_v45 = vsel %vm509_vm10, %v959_v34, %v506_v8  ;;  %v675_v46 = vmul.f32 %v961_v43, %v659_v10  ;;  %v656_v48 = vpop.xlane.xlu1 %655  ;;  %vm680_vm12 = vweird.f32 %v961_v43 }
 0x2ba   :  { %v515_v49 = vsel %vm512_vm11, %v514_v44, %v510_v45  ;;  %962 = vrcp.f32 %v656_v48  ;;  %vm681_vm14 = vmor %vm679_vm13, %vm680_vm12  ;;  %v671_v1 = vand.u32 2147483648, %v656_v48  ;;  %vm665_vm3 = vweird.f32 %v656_v48  ;;  %v931_v44 = vld [vmem:[%s1337_s4] ss:$0 sm:$0xff] }
 0x2bb   :  { %v676_v15 = vsub.f32 1.0, %v675_v46  ;;  %v530_v50 = vmul.f32 %v1244_v20, %v515_v49  ;;  %v669_v3 = vand.u32 2147483647, %v656_v48 }
 0x2bc   :  { %v672_v6 = vor.u32 1.1754944e-38, %v671_v1 }
 0x2bd   :  { %v677_v52 = vmul.f32 %v961_v43, %v676_v15  ;;  %895 = vmatmul.msk.f32.vlgmr.msrb.gmra.mxu3 %vm114_vm1, %v530_v50  ;;  %vm670_vm5 = vcmp.eq.f32.partialorder %v669_v3, 8.507059e+37 }
 0x2bf   :  { %v678_v54 = vadd.f32 %v961_v43, %v677_v52 }
 0x2c0   :  { %v963_v56 = vpop.eup %962 }
 0x2c1   :  { %v682_v55 = vsel %vm681_vm14, %v961_v43, %v678_v54  ;;  %v661_v58 = vmul.f32 %v963_v56, %v656_v48  ;;  %vm666_vm2 = vweird.f32 %v963_v56 }
 0x2c2   :  { %v687_v59 = vsel %vm684_vm15, %v686_v57, %v682_v55  ;;  %vm667_vm4 = vmor %vm665_vm3, %vm666_vm2 }
 0x2c3   :  { %v662_v60 = vsub.f32 1.0, %v661_v58  ;;  %v689_v61 = vmul.f32 %v1250_v27, %v687_v59 }
 0x2c5   :  { %v663_v63 = vmul.f32 %v963_v56, %v662_v60  ;;  %902 = vmatmul.msk.f32.vlgmr.msra.gmra.mxu1 %vm114_vm1, %v689_v61 }
 0x2c7   :  { %v664_v20 = vadd.f32 %v963_v56, %v663_v63 }
 0x2c9   :  { %v668_v5 = vsel %vm667_vm4, %v963_v56, %v664_v20 }
 0x2ca   :  { %v673_v7 = vsel %vm670_vm5, %v672_v6, %v668_v5 }
 0x2cb   :  { %v688_v11 = vmul.f32 %v1255_v29, %v673_v7 }
 0x2d1   :  { %v691_v9 = vpop.permute.xlu1 %690 }
 0x2d2   :  { %711 = vmatpush.msra.mxu3 %v691_v9 }
 0x2d3   :  { %901 = vmatmul.msk.f32.vlgmr.msra.gmra.mxu3 %vm114_vm1, %v688_v11 }
 0x318   :  { %v239_v27 = vpop.f32.mrf.mxu3 }
 0x321   :  { %v265_v12 = vpop.f32.mrf.mxu3 }
 0x328   :  { %v423_v62 = vpop.f32.mrf.mxu1 }
 0x329   :  { %v397_v13 = vpop.f32.mrf.mxu3 }
 0x32a   :  { %772 = vrot.lane.b32.xlu0 %v397_v13, %s1094_s30 }
 0x332   :  { %v581_v14 = vpop.f32.mrf.mxu1 }
 0x333   :  { %782 = vrot.lane.b32.xlu1 %v581_v14, %s1108_s23 }
 0x33b   :  { %744 = vrot.lane.b32.xlu1 %v1276_v26, %s1094_s30 }
 0x340   :  { %v555_v16 = vpop.f32.mrf.mxu3 }
 0x341   :  { %780 = vrot.lane.b32.xlu2 %v555_v16, %s1108_s23 }
 0x342   :  { %v739_v18 = vpop.f32.mrf.mxu1 }
 0x343   :  { %754 = vrot.lane.b32.xlu1 %v688_v11, %s1109_s24 }
 0x349   :  { %774 = vrot.lane.b32.xlu2 %v423_v62, %s1094_s30 }
 0x351   :  { %742 = vrot.lane.b32.xlu2 %v1271_v17, %s1094_s30 }
 0x356   :  { %v713_v29 = vpop.f32.mrf.mxu3 }
 0x357   :  { %788 = vrot.lane.b32.xlu0 %v713_v29, %s1109_s24 }
 0x359   :  { %750 = vrot.lane.b32.xlu2 %v1281_v39, %s1108_s23 }
 0x35f   :  { %790 = vrot.lane.b32.xlu0 %v739_v18, %s1109_s24 }
 0x367   :  { %748 = vrot.lane.b32.xlu0 %v530_v50, %s1108_s23 }
 0x36f   :  { %756 = vrot.lane.b32.xlu0 %v689_v61, %s1109_s24 }
 0x39b   :  { %v781_v24 = vpop.permute.xlu2 %780 }
 0x39c   :  { %v773_v25 = vpop.permute.xlu0 %772 }
 0x39d   :  { %v794_v17 = vsel %vm114_vm1, %v239_v27, %v773_v25 }
 0x39e   :  { %v796_v2 = vsel %vm762_vm6, %v794_v17, %v781_v24 }
 0x3a3   :  { %v775_v30 = vpop.permute.xlu2 %774 }
 0x3a4   :  { %v795_v32 = vsel %vm114_vm1, %v265_v12, %v775_v30 }
 0x3a5   :  { %v783_v26 = vpop.permute.xlu1 %782 }
 0x3a6   :  { %v797_v34 = vsel %vm762_vm6, %v795_v32, %v783_v26 }
 0x3ab   :  { %v743_v4 = vpop.permute.xlu2 %742 }
 0x3ac   :  { %v760_v10 = vsel %vm114_vm1, %v1261_v47, %v743_v4 }
 0x3ad   :  { %v745_v33 = vpop.permute.xlu1 %744 }
 0x3ae   :  { %v761_v42 = vsel %vm114_vm1, %v1266_v0, %v745_v33 }
 0x3b3   :  { %v751_v41 = vpop.permute.xlu2 %750 }
 0x3b4   :  { %v764_v47 = vsel %vm762_vm6, %v761_v42, %v751_v41 }
 0x3b5   :  { %v755_v38 = vpop.permute.xlu1 %754 }
 0x3c9   :  { %v789_v28 = vpop.permute.xlu0 %788 }
 0x3ca   :  { %v798_v31 = vsel %vm765_vm7, %v796_v2, %v789_v28 }
 0x3cb   :  { %903 = vmatmul.msk.f32.vlgmr.msrb.gmra.mxu2 %vm81_vm0, %v798_v31 }
 0x3d1   :  { %v791_v35 = vpop.permute.xlu0 %790 }
 0x3d2   :  { %v799_v36 = vsel %vm765_vm7, %v797_v34, %v791_v35 }
 0x3d3   :  { %904 = vmatmul.msk.f32.gmra.mxu2 %vm81_vm0, %v799_v36 }
 0x3d9   :  { %v749_v37 = vpop.permute.xlu0 %748 }
 0x3da   :  { %v763_v39 = vsel %vm762_vm6, %v760_v10, %v749_v37 }
 0x3db   :  { %v766_v40 = vsel %vm765_vm7, %v763_v39, %v755_v38 }
 0x3dc   :  { %768 = vst.msk [vmem:[#allocation9] sm:$0xff] %vm81_vm0, %v766_v40 }
 0x3e1   :  { %v757_v8 = vpop.permute.xlu0 %756 }
 0x3e2   :  { %v767_v43 = vsel %vm765_vm7, %v764_v47, %v757_v8 }
 0x3e3   :  { %769 = vst.msk [vmem:[#allocation9 + $0x8] sm:$0xff] %vm81_vm0, %v767_v43 }
 0x3e4   :  { %864 = dma.vmem_to_hbm [thread:$0]  %s857_s26, 256, %s859_s7, [#allocation10], %s1093_s29, %s1093_s29, %s1094_s30  }
 0x44e   :  { %v831_v45 = vpop.f32.mrf.mxu2 }
 0x44f   :  { %v832_v46 = vadd.f32 %v931_v44, %v831_v45 }
 0x451   :  { %837 = vst.msk [vmem:[#allocation8] sm:$0xff] %vm81_vm0, %v832_v46 }
 0x456   :  { %v834_v0 = vpop.f32.mrf.mxu2 }
 0x457   :  { %v835_v48 = vadd.f32 %v931_v44, %v834_v0 }
 0x459   :  { %838 = vst.msk [vmem:[#allocation8 + $0x8] sm:$0xff] %vm81_vm0, %v835_v48 }
 0x45a   :  { %851 = dma.vmem_to_hbm [thread:$0]  %s844_s10, 256, %s846_s11, [#allocation4], %s1093_s29, %s1093_s29, %s1094_s30  }
 0x45b   :  { %1088 = dma.done.wait [#allocation4], 256  }
 0x45c   :  { %1089 = vsyncadd [#allocation4], 4294967040 }
 0x45d   :  { %1090 = dma.done.wait [#allocation10], 256  }
 0x45e   :  { %1091 = vsyncadd [#allocation10], 4294967040 }
 0x45f   :  { %873 = vsyncpa [#allocation3], 1 }
 0x460   :  { %874 = vsyncpa [#allocation6], 1 }
 0x461   :  { %875 = vsyncpa [#allocation4], 1 }
 0x462   :  { %876 = vsyncpa [#allocation10], 1 }

</bundles_post_ra>
